<compile_context>
chip_gen: v5e
topology: v5e:2x2
jax: 0.10.0
libtpu: 0.0.40
codegen_flags: <defaults>
</compile_context>

<pallas_src>
import jax
import jax.numpy as jnp
from jax import lax
from jax.experimental import pallas as pl
from jax.experimental.pallas import tpu as pltpu

EPS = 1e-5
NEG_SLOPE = 0.2


def _resblock_kernel(x_ref, mask_ref, w1_ref, b1_ref, w2_ref, b2_ref, o_ref):
    # x_ref   : (1, C, H, W)  input image (NCHW block; read once, reused for residual)
    # mask_ref: (1, H*Wp)     1.0 on valid columns of the flat strip, 0.0 on the two
    #                         embedded pad columns per row (Wp = W + 2)
    # w*_ref  : (C, 9*C)      conv weights folded to im2col form (Cout, kH*kW*Cin)
    # b*_ref  : (C, 1)        conv biases
    # o_ref   : (1, C, H, W)  output
    _, C, H, W = x_ref.shape
    Wp = W + 2                      # row width including the 2 pad columns
    HWp = H * Wp                    # flat "interior strip" length
    LEAD = Wp + 1                   # zeros before the first interior pixel (top pad row
                                    # + left pad of first row); also the max tap offset/2
    n_inv = 1.0 / (H * W)

    x = x_ref[0]                                            # (C, H, W) float32
    mask = mask_ref[...]                                    # (1, HWp)
    zlead = jnp.zeros((C, LEAD), jnp.float32)

    def conv3x3(strip, w_ref, b_ref):
        # strip: (C, HWp) = interior rows, each right-padded by 2 zero columns.
        # Embed into the flat zero-padded image; every (dy, dx) tap is then a
        # contiguous lane slice at offset dy*Wp + dx.  Stack the 9 taps and do a
        # single (C, 9C) x (9C, HWp) MXU matmul.
        p = jnp.concatenate([zlead, strip, zlead], axis=1)  # (C, HWp + 2*LEAD)
        taps = [p[:, dy * Wp + dx: dy * Wp + dx + HWp]
                for dy in range(3) for dx in range(3)]
        cols = jnp.concatenate(taps, axis=0)                # (9C, HWp) im2col
        acc = jnp.dot(w_ref[...], cols,
                      preferred_element_type=jnp.float32)   # (C, HWp)
        return acc + b_ref[...]

    def instance_norm(a):
        # per-channel stats over the H*W valid positions, single pass over `a`
        am = a * mask
        mean = jnp.sum(am, axis=1, keepdims=True) * n_inv
        ex2 = jnp.sum(am * am, axis=1, keepdims=True) * n_inv
        var = ex2 - mean * mean
        return (a - mean) * lax.rsqrt(var + EPS)

    # interior strip of the input: each row of x followed by two zero columns
    x_strip = jnp.concatenate(
        [x, jnp.zeros((C, H, 2), jnp.float32)], axis=2).reshape(C, HWp)

    # conv1 -> InstanceNorm -> LeakyReLU(0.2); mask zeroes the embedded pad columns
    y = instance_norm(conv3x3(x_strip, w1_ref, b1_ref))
    y = jnp.where(y >= 0.0, y, NEG_SLOPE * y) * mask

    # conv2 -> InstanceNorm
    y = instance_norm(conv3x3(y, w2_ref, b2_ref))

    # residual add: drop the 2 pad columns per row and restore (C, H, W)
    out = x + y.reshape(C, H, Wp)[:, :, :W]
    o_ref[...] = out.reshape(1, C, H, W)


def residual_block(x_nchw, w1, b1, w2, b2):
    """x_nchw: (N, C, H, W) float32 (PyTorch layout, kept end-to-end).
    w1, w2: (3, 3, Cin, Cout) conv kernels; b1, b2: (C,) biases."""
    N, C, H, W = x_nchw.shape
    Wp = W + 2
    HWp = H * Wp

    x = x_nchw.astype(jnp.float32)
    # Fold each 3x3 kernel into a (Cout, 9*Cin) matrix, tap-major / channel-minor,
    # matching the in-kernel im2col row order.
    w1m = jnp.transpose(w1.astype(jnp.float32).reshape(9 * C, C))   # (C, 9C)
    w2m = jnp.transpose(w2.astype(jnp.float32).reshape(9 * C, C))
    b1c = b1.astype(jnp.float32).reshape(C, 1)
    b2c = b2.astype(jnp.float32).reshape(C, 1)
    # validity mask for the flat row-strip layout (W real cols + 2 pad cols per row)
    mask = ((jnp.arange(HWp, dtype=jnp.int32) % Wp) < W)
    mask = mask.astype(jnp.float32).reshape(1, HWp)

    return pl.pallas_call(
        _resblock_kernel,
        out_shape=jax.ShapeDtypeStruct((N, C, H, W), jnp.float32),
        grid_spec=pltpu.PrefetchScalarGridSpec(
            num_scalar_prefetch=0,
            grid=(N,),
            in_specs=[
                pl.BlockSpec((1, C, H, W), lambda b: (b, 0, 0, 0)),
                pl.BlockSpec((1, HWp), lambda b: (0, 0)),
                pl.BlockSpec((C, 9 * C), lambda b: (0, 0)),
                pl.BlockSpec((C, 1), lambda b: (0, 0)),
                pl.BlockSpec((C, 9 * C), lambda b: (0, 0)),
                pl.BlockSpec((C, 1), lambda b: (0, 0)),
            ],
            out_specs=pl.BlockSpec((1, C, H, W), lambda b: (b, 0, 0, 0)),
        ),
        compiler_params=pltpu.CompilerParams(
            dimension_semantics=("parallel",),
            vmem_limit_bytes=32 * 1024 * 1024,
        ),
    )(x, mask, w1m, b1c, w2m, b2c)


def _reference(x_nchw, w1, b1, w2, b2):
    """Pure-JAX reference of the same forward pass (NHWC conv via lax)."""
    x = jnp.transpose(x_nchw, (0, 2, 3, 1))
    dn = lax.conv_dimension_numbers(x.shape, w1.shape, ("NHWC", "HWIO", "NHWC"))

    def conv(inp, w, b):
        return lax.conv_general_dilated(inp, w, (1, 1), "SAME",
                                        dimension_numbers=dn) + b

    def inorm(inp):
        m = jnp.mean(inp, axis=(1, 2), keepdims=True)
        v = jnp.mean((inp - m) ** 2, axis=(1, 2), keepdims=True)
        return (inp - m) * lax.rsqrt(v + EPS)

    y = conv(x, w1, b1)
    y = inorm(y)
    y = jnp.where(y >= 0, y, NEG_SLOPE * y)
    y = conv(y, w2, b2)
    y = inorm(y)
    return jnp.transpose(x + y, (0, 3, 1, 2))


if __name__ == "__main__":
    N, C, H, W = 2, 4, 16, 16
    key = jax.random.PRNGKey(0)
    kx, k1, kb1, k2, kb2 = jax.random.split(key, 5)

    x = jax.random.normal(kx, (N, C, H, W), dtype=jnp.float32)
    # Deterministic synthetic parameters (Conv2d(C, C, 3) -> (kH, kW, Cin, Cout))
    fan_in = C * 3 * 3
    bound = 1.0 / (fan_in ** 0.5)
    w1 = jax.random.uniform(k1, (3, 3, C, C), jnp.float32, -bound, bound)
    b1 = jax.random.uniform(kb1, (C,), jnp.float32, -bound, bound)
    w2 = jax.random.uniform(k2, (3, 3, C, C), jnp.float32, -bound, bound)
    b2 = jax.random.uniform(kb2, (C,), jnp.float32, -bound, bound)

    out = jax.block_until_ready(residual_block(x, w1, b1, w2, b2))

    ref = _reference(x, w1, b1, w2, b2)
    assert out.shape == (N, C, H, W)
    assert jnp.max(jnp.abs(out - ref)) < 2e-4, "mismatch vs reference"

    print("KERNEL_OK")
</pallas_src>

<mosaic_0001>
module attributes {stable_mosaic.version = 11 : i64} {
  func.func @_resblock_kernel(%arg0: i32, %arg1: memref<1x4x16x16xf32, #tpu.memory_space<vmem>>, %arg2: memref<1x288xf32, #tpu.memory_space<vmem>>, %arg3: memref<4x36xf32, #tpu.memory_space<vmem>>, %arg4: memref<4x1xf32, #tpu.memory_space<vmem>>, %arg5: memref<4x36xf32, #tpu.memory_space<vmem>>, %arg6: memref<4x1xf32, #tpu.memory_space<vmem>>, %arg7: memref<1x4x16x16xf32, #tpu.memory_space<vmem>>) attributes {dimension_semantics = [#tpu.dimension_semantics<parallel>], iteration_bounds = array<i64: 2>, scalar_prefetch = 0 : i64, scratch_operands = 0 : i64, tpu.core_type = #tpu.core_type<tc>, window_params = [{transform_indices = @transform_0, window_bounds = array<i64: 1, 4, 16, 16>}, {pipeline_mode = #tpu.pipeline_mode<synchronous>, transform_indices = @transform_1, window_bounds = array<i64: 1, 288>}, {pipeline_mode = #tpu.pipeline_mode<synchronous>, transform_indices = @transform_2, window_bounds = array<i64: 4, 36>}, {pipeline_mode = #tpu.pipeline_mode<synchronous>, transform_indices = @transform_3, window_bounds = array<i64: 4, 1>}, {pipeline_mode = #tpu.pipeline_mode<synchronous>, transform_indices = @transform_4, window_bounds = array<i64: 4, 36>}, {pipeline_mode = #tpu.pipeline_mode<synchronous>, transform_indices = @transform_5, window_bounds = array<i64: 4, 1>}, {transform_indices = @transform_6, window_bounds = array<i64: 1, 4, 16, 16>}]} {
    %c0 = arith.constant 0 : index
    %c0_0 = arith.constant 0 : index
    %c0_1 = arith.constant 0 : index
    %c0_2 = arith.constant 0 : index
    %0 = vector.load %arg1[%c0, %c0_0, %c0_1, %c0_2] : memref<1x4x16x16xf32, #tpu.memory_space<vmem>>, vector<1x4x16x16xf32>
    %1 = vector.shape_cast %0 : vector<1x4x16x16xf32> to vector<4x16x16xf32>
    %c0_3 = arith.constant 0 : index
    %c0_4 = arith.constant 0 : index
    %2 = vector.load %arg2[%c0_3, %c0_4] : memref<1x288xf32, #tpu.memory_space<vmem>>, vector<1x288xf32>
    %cst = arith.constant 0.000000e+00 : f32
    %3 = vector.broadcast %cst : f32 to vector<4x19xf32>
    %cst_5 = arith.constant 0.000000e+00 : f32
    %4 = vector.broadcast %cst_5 : f32 to vector<4x16x2xf32>
    %5 = tpu.concatenate %1, %4 in 2 : vector<4x16x16xf32>, vector<4x16x2xf32> -> vector<4x16x18xf32>
    %6 = vector.shape_cast %5 : vector<4x16x18xf32> to vector<4x288xf32>
    %7 = tpu.concatenate %3, %6, %3 in 1 : vector<4x19xf32>, vector<4x288xf32>, vector<4x19xf32> -> vector<4x326xf32>
    %8 = vector.extract_strided_slice %7 {offsets = [0, 0], sizes = [4, 288], strides = [1, 1]} : vector<4x326xf32> to vector<4x288xf32>
    %9 = vector.extract_strided_slice %7 {offsets = [0, 1], sizes = [4, 288], strides = [1, 1]} : vector<4x326xf32> to vector<4x288xf32>
    %10 = vector.extract_strided_slice %7 {offsets = [0, 2], sizes = [4, 288], strides = [1, 1]} : vector<4x326xf32> to vector<4x288xf32>
    %11 = vector.extract_strided_slice %7 {offsets = [0, 18], sizes = [4, 288], strides = [1, 1]} : vector<4x326xf32> to vector<4x288xf32>
    %12 = vector.extract_strided_slice %7 {offsets = [0, 19], sizes = [4, 288], strides = [1, 1]} : vector<4x326xf32> to vector<4x288xf32>
    %13 = vector.extract_strided_slice %7 {offsets = [0, 20], sizes = [4, 288], strides = [1, 1]} : vector<4x326xf32> to vector<4x288xf32>
    %14 = vector.extract_strided_slice %7 {offsets = [0, 36], sizes = [4, 288], strides = [1, 1]} : vector<4x326xf32> to vector<4x288xf32>
    %15 = vector.extract_strided_slice %7 {offsets = [0, 37], sizes = [4, 288], strides = [1, 1]} : vector<4x326xf32> to vector<4x288xf32>
    %16 = vector.extract_strided_slice %7 {offsets = [0, 38], sizes = [4, 288], strides = [1, 1]} : vector<4x326xf32> to vector<4x288xf32>
    %17 = tpu.concatenate %8, %9, %10, %11, %12, %13, %14, %15, %16 in 0 : vector<4x288xf32>, vector<4x288xf32>, vector<4x288xf32>, vector<4x288xf32>, vector<4x288xf32>, vector<4x288xf32>, vector<4x288xf32>, vector<4x288xf32>, vector<4x288xf32> -> vector<36x288xf32>
    %c0_6 = arith.constant 0 : index
    %c0_7 = arith.constant 0 : index
    %18 = vector.load %arg3[%c0_6, %c0_7] : memref<4x36xf32, #tpu.memory_space<vmem>>, vector<4x36xf32>
    %cst_8 = arith.constant dense<0.000000e+00> : vector<4x288xf32>
    %19 = tpu.matmul %18, %17, %cst_8 {dimension_numbers = #tpu.dot_dimension_numbers<[1], [0], [0], [1], [0, 0, 1, 1], [], []>} : vector<4x36xf32>, vector<36x288xf32>, vector<4x288xf32> -> vector<4x288xf32>
    %c0_9 = arith.constant 0 : index
    %c0_10 = arith.constant 0 : index
    %20 = vector.load %arg4[%c0_9, %c0_10] : memref<4x1xf32, #tpu.memory_space<vmem>>, vector<4x1xf32>
    %21 = vector.broadcast %20 : vector<4x1xf32> to vector<4x288xf32>
    %22 = arith.addf %19, %21 : vector<4x288xf32>
    %23 = vector.broadcast %2 : vector<1x288xf32> to vector<4x288xf32>
    %24 = arith.mulf %22, %23 : vector<4x288xf32>
    %cst_11 = arith.constant dense<0.000000e+00> : vector<4xf32>
    %25 = vector.multi_reduction <add>, %24, %cst_11 [1] : vector<4x288xf32> to vector<4xf32>
    %26 = vector.shape_cast %25 : vector<4xf32> to vector<4x1xf32>
    %cst_12 = arith.constant 3.906250e-03 : f32
    %27 = vector.broadcast %cst_12 : f32 to vector<4x1xf32>
    %28 = arith.mulf %26, %27 : vector<4x1xf32>
    %29 = arith.mulf %24, %24 : vector<4x288xf32>
    %cst_13 = arith.constant dense<0.000000e+00> : vector<4xf32>
    %30 = vector.multi_reduction <add>, %29, %cst_13 [1] : vector<4x288xf32> to vector<4xf32>
    %31 = vector.shape_cast %30 : vector<4xf32> to vector<4x1xf32>
    %cst_14 = arith.constant 3.906250e-03 : f32
    %32 = vector.broadcast %cst_14 : f32 to vector<4x1xf32>
    %33 = arith.mulf %31, %32 : vector<4x1xf32>
    %34 = arith.mulf %28, %28 : vector<4x1xf32>
    %35 = arith.subf %33, %34 : vector<4x1xf32>
    %36 = vector.broadcast %28 : vector<4x1xf32> to vector<4x288xf32>
    %37 = arith.subf %22, %36 : vector<4x288xf32>
    %cst_15 = arith.constant 9.99999974E-6 : f32
    %38 = vector.broadcast %cst_15 : f32 to vector<4x1xf32>
    %39 = arith.addf %35, %38 : vector<4x1xf32>
    %40 = math.rsqrt %39 : vector<4x1xf32>
    %41 = vector.broadcast %40 : vector<4x1xf32> to vector<4x288xf32>
    %42 = arith.mulf %37, %41 : vector<4x288xf32>
    %cst_16 = arith.constant 0.000000e+00 : f32
    %43 = vector.broadcast %cst_16 : f32 to vector<4x288xf32>
    %44 = arith.cmpf oge, %42, %43 : vector<4x288xf32>
    %cst_17 = arith.constant 2.000000e-01 : f32
    %45 = vector.broadcast %cst_17 : f32 to vector<4x288xf32>
    %46 = arith.mulf %45, %42 : vector<4x288xf32>
    %47 = arith.select %44, %42, %46 : vector<4x288xi1>, vector<4x288xf32>
    %48 = vector.broadcast %2 : vector<1x288xf32> to vector<4x288xf32>
    %49 = arith.mulf %47, %48 : vector<4x288xf32>
    %50 = tpu.concatenate %3, %49, %3 in 1 : vector<4x19xf32>, vector<4x288xf32>, vector<4x19xf32> -> vector<4x326xf32>
    %51 = vector.extract_strided_slice %50 {offsets = [0, 0], sizes = [4, 288], strides = [1, 1]} : vector<4x326xf32> to vector<4x288xf32>
    %52 = vector.extract_strided_slice %50 {offsets = [0, 1], sizes = [4, 288], strides = [1, 1]} : vector<4x326xf32> to vector<4x288xf32>
    %53 = vector.extract_strided_slice %50 {offsets = [0, 2], sizes = [4, 288], strides = [1, 1]} : vector<4x326xf32> to vector<4x288xf32>
    %54 = vector.extract_strided_slice %50 {offsets = [0, 18], sizes = [4, 288], strides = [1, 1]} : vector<4x326xf32> to vector<4x288xf32>
    %55 = vector.extract_strided_slice %50 {offsets = [0, 19], sizes = [4, 288], strides = [1, 1]} : vector<4x326xf32> to vector<4x288xf32>
    %56 = vector.extract_strided_slice %50 {offsets = [0, 20], sizes = [4, 288], strides = [1, 1]} : vector<4x326xf32> to vector<4x288xf32>
    %57 = vector.extract_strided_slice %50 {offsets = [0, 36], sizes = [4, 288], strides = [1, 1]} : vector<4x326xf32> to vector<4x288xf32>
    %58 = vector.extract_strided_slice %50 {offsets = [0, 37], sizes = [4, 288], strides = [1, 1]} : vector<4x326xf32> to vector<4x288xf32>
    %59 = vector.extract_strided_slice %50 {offsets = [0, 38], sizes = [4, 288], strides = [1, 1]} : vector<4x326xf32> to vector<4x288xf32>
    %60 = tpu.concatenate %51, %52, %53, %54, %55, %56, %57, %58, %59 in 0 : vector<4x288xf32>, vector<4x288xf32>, vector<4x288xf32>, vector<4x288xf32>, vector<4x288xf32>, vector<4x288xf32>, vector<4x288xf32>, vector<4x288xf32>, vector<4x288xf32> -> vector<36x288xf32>
    %c0_18 = arith.constant 0 : index
    %c0_19 = arith.constant 0 : index
    %61 = vector.load %arg5[%c0_18, %c0_19] : memref<4x36xf32, #tpu.memory_space<vmem>>, vector<4x36xf32>
    %cst_20 = arith.constant dense<0.000000e+00> : vector<4x288xf32>
    %62 = tpu.matmul %61, %60, %cst_20 {dimension_numbers = #tpu.dot_dimension_numbers<[1], [0], [0], [1], [0, 0, 1, 1], [], []>} : vector<4x36xf32>, vector<36x288xf32>, vector<4x288xf32> -> vector<4x288xf32>
    %c0_21 = arith.constant 0 : index
    %c0_22 = arith.constant 0 : index
    %63 = vector.load %arg6[%c0_21, %c0_22] : memref<4x1xf32, #tpu.memory_space<vmem>>, vector<4x1xf32>
    %64 = vector.broadcast %63 : vector<4x1xf32> to vector<4x288xf32>
    %65 = arith.addf %62, %64 : vector<4x288xf32>
    %66 = vector.broadcast %2 : vector<1x288xf32> to vector<4x288xf32>
    %67 = arith.mulf %65, %66 : vector<4x288xf32>
    %cst_23 = arith.constant dense<0.000000e+00> : vector<4xf32>
    %68 = vector.multi_reduction <add>, %67, %cst_23 [1] : vector<4x288xf32> to vector<4xf32>
    %69 = vector.shape_cast %68 : vector<4xf32> to vector<4x1xf32>
    %cst_24 = arith.constant 3.906250e-03 : f32
    %70 = vector.broadcast %cst_24 : f32 to vector<4x1xf32>
    %71 = arith.mulf %69, %70 : vector<4x1xf32>
    %72 = arith.mulf %67, %67 : vector<4x288xf32>
    %cst_25 = arith.constant dense<0.000000e+00> : vector<4xf32>
    %73 = vector.multi_reduction <add>, %72, %cst_25 [1] : vector<4x288xf32> to vector<4xf32>
    %74 = vector.shape_cast %73 : vector<4xf32> to vector<4x1xf32>
    %cst_26 = arith.constant 3.906250e-03 : f32
    %75 = vector.broadcast %cst_26 : f32 to vector<4x1xf32>
    %76 = arith.mulf %74, %75 : vector<4x1xf32>
    %77 = arith.mulf %71, %71 : vector<4x1xf32>
    %78 = arith.subf %76, %77 : vector<4x1xf32>
    %79 = vector.broadcast %71 : vector<4x1xf32> to vector<4x288xf32>
    %80 = arith.subf %65, %79 : vector<4x288xf32>
    %cst_27 = arith.constant 9.99999974E-6 : f32
    %81 = vector.broadcast %cst_27 : f32 to vector<4x1xf32>
    %82 = arith.addf %78, %81 : vector<4x1xf32>
    %83 = math.rsqrt %82 : vector<4x1xf32>
    %84 = vector.broadcast %83 : vector<4x1xf32> to vector<4x288xf32>
    %85 = arith.mulf %80, %84 : vector<4x288xf32>
    %86 = vector.shape_cast %85 : vector<4x288xf32> to vector<4x16x18xf32>
    %87 = vector.extract_strided_slice %86 {offsets = [0, 0, 0], sizes = [4, 16, 16], strides = [1, 1, 1]} : vector<4x16x18xf32> to vector<4x16x16xf32>
    %88 = arith.addf %1, %87 : vector<4x16x16xf32>
    %89 = vector.shape_cast %88 : vector<4x16x16xf32> to vector<1x4x16x16xf32>
    %c0_28 = arith.constant 0 : index
    %c0_29 = arith.constant 0 : index
    %c0_30 = arith.constant 0 : index
    %c0_31 = arith.constant 0 : index
    %90 = vector.load %arg7[%c0_28, %c0_29, %c0_30, %c0_31] : memref<1x4x16x16xf32, #tpu.memory_space<vmem>>, vector<1x4x16x16xf32>
    tpu.vector_store %arg7[%c0_28, %c0_29, %c0_30, %c0_31], %89 {strides = array<i32>} : memref<1x4x16x16xf32, #tpu.memory_space<vmem>>, vector<1x4x16x16xf32>,
    return
  }
  func.func @transform_0(%arg0: i32) -> (i32, i32, i32, i32) {
    %c0_i32 = arith.constant 0 : i32
    %c0_i32_0 = arith.constant 0 : i32
    %c0_i32_1 = arith.constant 0 : i32
    %c0_i32_2 = arith.constant 0 : i32
    return %arg0, %c0_i32, %c0_i32_0, %c0_i32_1 : i32, i32, i32, i32
  }
  func.func @transform_1(%arg0: i32) -> (i32, i32) {
    %c0_i32 = arith.constant 0 : i32
    %c0_i32_0 = arith.constant 0 : i32
    %c0_i32_1 = arith.constant 0 : i32
    return %c0_i32, %c0_i32_0 : i32, i32
  }
  func.func @transform_2(%arg0: i32) -> (i32, i32) {
    %c0_i32 = arith.constant 0 : i32
    %c0_i32_0 = arith.constant 0 : i32
    %c0_i32_1 = arith.constant 0 : i32
    return %c0_i32, %c0_i32_0 : i32, i32
  }
  func.func @transform_3(%arg0: i32) -> (i32, i32) {
    %c0_i32 = arith.constant 0 : i32
    %c0_i32_0 = arith.constant 0 : i32
    %c0_i32_1 = arith.constant 0 : i32
    return %c0_i32, %c0_i32_0 : i32, i32
  }
  func.func @transform_4(%arg0: i32) -> (i32, i32) {
    %c0_i32 = arith.constant 0 : i32
    %c0_i32_0 = arith.constant 0 : i32
    %c0_i32_1 = arith.constant 0 : i32
    return %c0_i32, %c0_i32_0 : i32, i32
  }
  func.func @transform_5(%arg0: i32) -> (i32, i32) {
    %c0_i32 = arith.constant 0 : i32
    %c0_i32_0 = arith.constant 0 : i32
    %c0_i32_1 = arith.constant 0 : i32
    return %c0_i32, %c0_i32_0 : i32, i32
  }
  func.func @transform_6(%arg0: i32) -> (i32, i32, i32, i32) {
    %c0_i32 = arith.constant 0 : i32
    %c0_i32_0 = arith.constant 0 : i32
    %c0_i32_1 = arith.constant 0 : i32
    %c0_i32_2 = arith.constant 0 : i32
    return %arg0, %c0_i32, %c0_i32_0, %c0_i32_1 : i32, i32, i32, i32
  }
}

</mosaic_0001>

<bundles_post_ra>
// kernel: tpu_custom_call.1
= control target key start
LH: loop header
LB: loop body
LE: loop exit
PB: predicated region body
PF: predicated region fallthrough
CT: control target
= control target key end

     0   :  { %s2193_s0 = inlined_call_operand.hbm [shape: f32[2,4,16,16], index: 0, kind: input, shape index: {}]   ;;  %s2194_s1 = inlined_call_operand.hbm [shape: f32[1,288], index: 1, kind: input, shape index: {}]   ;;  %s2195_s2 = inlined_call_operand.vmem [shape: f32[4,36], index: 2, kind: input, shape index: {}]   ;;  %s2196_s3 = inlined_call_operand.vmem [shape: f32[4,1], index: 3, kind: input, shape index: {}]   ;;  %s2197_s4 = inlined_call_operand.vmem [shape: f32[4,36], index: 4, kind: input, shape index: {}]   ;;  %s2198_s5 = inlined_call_operand.vmem [shape: f32[4,1], index: 5, kind: input, shape index: {}]   ;;  %s2199_s6 = inlined_call_operand.hbm [shape: f32[2,4,16,16], index: 6, kind: output, shape index: {}]  }
   0x1   :  { %2205 = sst [smem:[#allocation13_spill]] %s2194_s1 }
   0x2   :  { %11 = vsyncpa [#allocation3], 0 }
   0x3   :  { %13 = vsyncpa [#allocation3 + $0x1], 0 }
   0x4   :  { %14 = vsyncpa [#allocation6], 0 }
   0x5   :  { %15 = vsyncpa [#allocation4], 0 }
   0x6   :  { %17 = vsyncpa [#allocation4 + $0x1], 0  ;;  %s1709_s21 = smov 0   ;;  %s1711_s22 = smov 0  }
   0x7   :  { %s1713_s23 = smov 0   ;;  %s1715_s24 = smov 0  }
   0x8 LB: > { %2206 = sst [smem:[#allocation11_spill]] %s1626_s23  ;;  %s1730_s25 = sadd.s32 4294967295, %s1630_s24   ;;  %s1630_s24 = sphi %s1715_s24, %s2256_s24   ;;  %s1626_s23 = sphi %s1713_s23, %s2253_s23   ;;  %s1622_s22 = sphi %s1711_s22, %s2255_s22   ;;  %s1618_s21 = sphi %s1709_s21, %s2254_s21  }
   0x9   : > { %s1288_s26 = sadd.s32 4294967294, %s1630_s24   ;;  %s1734_s27 = sadd.s32 1, %s1630_s24  }
   0xa   : > { %s30_s28 = sadd.s32 1, %s1626_s23  ;;  %s27_s29 = ssub.s32 %s1630_s24, %s1734_s27 }
   0xb   : > { %p37_p0 = scmp.ne.s32.totalorder %s1626_s23, %s1622_s22  ;;  %p28_p1 = scmp.eq.s32.totalorder %s27_s29, 0 }
   0xc   : > { %p38_p2 = scmp.eq.s32.totalorder %s1630_s24, 0  ;;  %p43_p3 = scmp.ne.s32.totalorder %s1622_s22, %s1618_s21 }
   0xd   : > { %p44_p4 = scmp.eq.s32.totalorder %s1730_s25, 0  ;;  %p172_p7 = scmp.eq.s32.totalorder %s1730_s25, 1 }
   0xe   : > { %s1746_s30 = scalar_select %p28_p1, %s1626_s23, %s30_s28  }
   0xf   : > { %p1748_p5 = por %p38_p2, %p37_p0  ;;  %p1754_p6 = por %p44_p4, %p43_p3 }
  0x10   : > { %2207 = sst [smem:[#allocation12_spill]] %s1746_s30  ;;  %p178_p8 = scmp.eq.s32.totalorder %s1288_s26, 1 }
  0x11   : > { %p1289_p9 = scmp.ge.s32.totalorder %s1630_s24, 1  ;;  %p185_p10 = scmp.lt.s32.totalorder %s1630_s24, 3 }
  0x12   : > { %p1761_p11 = por %p172_p7, %p37_p0  ;;  %p1765_p12 = por %p178_p8, %p43_p3 }
  0x13   : > { %p1769_p13 = pnand %p1289_p9, %p185_p10  ;;  %s2213_s1 = sld [smem:[#allocation13_spill]] }
  0x14   : > { %s1632_s15 = smov [#allocation5]   ;;  %p1339_p3 = scmp.lt.s32.totalorder %s1630_s24, 2 }
  0x15   : > { %p1326_p1 = pneg %p1769_p13  ;;  %s199_s16 = sshll.u32 %s1632_s15, 4  ;;  %s200_s16 = int_to_ptr.vmem [resolvable:$true] %s199_s16 }
  0x16   : > { %s222_s17 = sand.u32 1, %s1626_s23   ;;  %p1785_p7 = pnand %p1339_p3, %p1748_p5 }
  0x17   : > { %p1327_p2 = pnand %p1326_p1, %p44_p4  ;;  %s1292_s19 = sshll.u32 %s222_s17, 6 }
  0x18   : > { %s1316_s20 = sshll.u32 %s1630_s24, 6  ;;  %s226_s13 = scalar_lea.vmem [#allocation2], %s1292_s19 }
  0x19   : > { %s197_s14 = sshll.u32 %s2213_s1, 4  ;;  %s231_s29 = scalar_lea.hbm %s2193_s0, %s1316_s20  ;;  %s198_s14 = int_to_ptr.hbm [resolvable:$true] %s197_s14 }
  0x1a   : > { %1329 = dma.hbm_to_vmem [thread:$0]  (!%p1327_p2), %s198_s14, 48, %s200_s16, [#allocation6]  }
  0x1b   : > { %s232_s12 = sshll.u32 %s231_s29, 4  ;;  %s234_s15 = sshll.u32 %s226_s13, 4  ;;  %s233_s12 = int_to_ptr.hbm [resolvable:$true] %s232_s12  ;;  %s235_s15 = int_to_ptr.vmem [resolvable:$true] %s234_s15 }
  0x1c   : > { %s223_s1 = scalar_lea.sflag [#allocation3], %s222_s17  ;;  %s1530_s30 = sshra.s32 %s233_s12, 4  ;;  %s1531_s30 = int_to_ptr.hbm [resolvable:$true] %s1530_s30 }
  0x1d   : > { %s1532_s7 = scalar_lea.hbm %s1531_s30, 64  ;;  %p1534_p8 = pneg %p1785_p7 }
  0x1e   : > { %p1533_p5 = scmp.ne.s32.totalorder %s1531_s30, %s1532_s7  ;;  %s1537_s23 = scalar_lea.hbm %s2193_s0, 128 }
  0x1f   : > { %p1538_p1 = scmp.lt.s32.totalorder %s1531_s30, %s2193_s0  ;;  %p1539_p2 = scmp.lt.s32.totalorder %s1537_s23, %s1532_s7 }
  0x20   : > { %p1535_p9 = pnand %p1534_p8, %p1533_p5 }
  0x21   : > { %p1540_p3 = por %p1539_p2, %p1538_p1 }
  0x22   : > { %p1536_p10 = pneg %p1535_p9 }
  0x24   : > { %p1541_p0 = pnand %p1540_p3, %p1536_p10 }
  0x26   : > { %1544 = shalt.err (!%p1541_p0)
}
  0x27   : > { %s1633_s17 = smov 128   ;;  %s1634_s19 = smov 8  }
  0x28   : > { %1333 = dma.hbm_to_vmem [thread:$0]  (!%p1785_p7), %s233_s12, 1024, %s235_s15, %s223_s1, %s1633_s17, %s1633_s17, %s1634_s19  }
  0x29   : > { %246 = sbr.rel (%p1769_p13) target bundleno = 1482 (0x5ca), region = 44  ;;  %s1806_s28 = sand.u32 (!%p1769_p13), 1, %s1622_s22  }
  0x2a   : > { %s1296_s30 = sshll.u32 (!%p1769_p13), %s1806_s28, 6  ;;  %s249_s23 = scalar_lea.sflag (!%p1769_p13), [#allocation3], %s1806_s28 }
  0x2b   : > { %s1812_s29 = scalar_lea.vmem (!%p1769_p13), [#allocation2], %s1296_s30 }
  0x2e   : > { %1605 = dma.done.wait (%p1754_p6), %s249_s23, 1024  }
  0x2f   : > { %1607 = vsyncadd (%p1754_p6), %s249_s23, 4294966272 }
  0x30   : > { %1609 = dma.done.wait (%p44_p4), [#allocation6], 48  }
  0x31   : > { %1611 = vsyncadd (%p44_p4), [#allocation6], 4294967248  ;;  %v1635_v0 = vmov 1983009808   ;;  %vm2201_vm0 = vcmask 130048   ;;  %v288_v4 = vld [vmem:[%s1812_s29 + $0x8] sm:$0xff] }
  0x32   : > { %v311_v1 = vunpack.c.l.s4 %v1635_v0  ;;  %v1636_v2 = vmov 1934713408   ;;  %v290_v5 = vld [vmem:[%s1812_s29 + $0x18] sm:$0xff]  ;;  %v292_v6 = vld [vmem:[%s1812_s29 + $0x28] sm:$0xff]  ;;  %vm2202_vm1 = vcmask 1047556   ;;  %v298_v8 = vsel %vm2201_vm0, %v288_v4, 0.0 }
  0x33   : > { %v335_v3 = vunpack.c.l.s4 %v1636_v2  ;;  %v294_v7 = vld [vmem:[%s1812_s29 + $0x38] sm:$0xff]  ;;  %v300_v9 = vsel %vm2201_vm0, %v290_v5, 0.0  ;;  %v302_v10 = vsel %vm2201_vm0, %v292_v6, 0.0  ;;  %v287_v12 = vld [vmem:[%s1812_s29] sm:$0xff]  ;;  %v289_v13 = vld [vmem:[%s1812_s29 + $0x10] sm:$0xff]  ;;  %v364_v16 = vrot.slane %v298_v8, 4 }
  0x34   : > { %v1829_v11 = vunpack.c.0.s8 %v311_v1  ;;  %v304_v14 = vsel %vm2201_vm0, %v294_v7, 0.0  ;;  %v362_v15 = vrot.slane %v302_v10, 4  ;;  %v376_v17 = vrot.slane %v300_v9, 4  ;;  %v291_v18 = vld [vmem:[%s1812_s29 + $0x20] sm:$0xff]  ;;  %v293_v19 = vld [vmem:[%s1812_s29 + $0x30] sm:$0xff]  ;;  %s1637_s1 = smov 52  }
  0x35   : > { %v1836_v20 = vunpack.c.0.s8 %v335_v3  ;;  %v374_v21 = vrot.slane %v304_v14, 4  ;;  %v297_v22 = vsel %vm2201_vm0, %v287_v12, 0.0  ;;  %v301_v23 = vsel %vm2201_vm0, %v291_v18, 0.0  ;;  %s1638_s8 = smov 16   ;;  %s1639_s11 = smov 70  }
  0x36   : > { %v363_v24 = vsel %vm2202_vm1, %v362_v15, %v298_v8  ;;  %v377_v25 = vsel %vm2202_vm1, %v304_v14, %v376_v17  ;;  %v299_v26 = vsel %vm2201_vm0, %v289_v13, 0.0  ;;  %v303_v27 = vsel %vm2201_vm0, %v293_v19, 0.0  ;;  %s1640_s18 = smov 36   ;;  %s1641_s12 = smov 88  }
  0x37   : > { %v369_v28 = vperm.slane %v363_v24, %v1829_v11  ;;  %v375_v29 = vsel %vm2202_vm1, %v374_v21, %v300_v9  ;;  %v365_v30 = vsel %vm2202_vm1, %v302_v10, %v364_v16  ;;  %v385_v31 = vperm.slane %v377_v25, %v1829_v11  ;;  %s1642_s13 = smov 18   ;;  %s1643_s15 = smov 34  }
  0x38   : > { %v381_v32 = vperm.slane %v375_v29, %v1829_v11  ;;  %v305_v33 = vrot.slane %v301_v23, 4  ;;  %v308_v34 = vrot.slane %v297_v22, 4  ;;  %v318_v35 = vrot.slane %v303_v27, 4  ;;  %s1644_s7 = smov 126   ;;  %s1645_s14 = smov 106  }
  0x39   : > { %v388_v36 = vrot.slane %v369_v28, 4  ;;  %v320_v37 = vrot.slane %v299_v26, 4  ;;  %v373_v43 = vperm.slane %v365_v30, %v1829_v11  ;;  %v398_v48 = vrot.slane %v385_v31, 4  ;;  %s1646_s16 = smov 124   ;;  %s1647_s26 = smov 54  }
  0x3a   : > { %v386_v38 = vrot.slane %v381_v32, 4  ;;  %v307_v39 = vsel %vm2202_vm1, %v305_v33, %v297_v22  ;;  %v319_v40 = vsel %vm2202_vm1, %v318_v35, %v299_v26  ;;  %v309_v41 = vsel %vm2202_vm1, %v301_v23, %v308_v34  ;;  %s1648_s20 = smov 14   ;;  %s1649_s17 = smov 90  }
  0x3b   : > { %v389_v42 = vsel %vm2202_vm1, %v381_v32, %v388_v36  ;;  %v313_v44 = vperm.slane %v307_v39, %v1829_v11  ;;  %v325_v45 = vperm.slane %v319_v40, %v1829_v11  ;;  %v317_v49 = vperm.slane %v309_v41, %v1829_v11  ;;  %s1650_s19 = smov 72   ;;  %s1651_s23 = smov 108  }
  0x3c   : > { %v397_v46 = vperm.slane %v389_v42, %v1836_v20  ;;  %v387_v47 = vsel %vm2202_vm1, %v386_v38, %v369_v28  ;;  %v321_v52 = vsel %vm2202_vm1, %v303_v27, %v320_v37  ;;  %v399_v58 = vsel %vm2202_vm1, %v398_v48, %v373_v43 }
  0x3d   : > { %v393_v50 = vperm.slane %v387_v47, %v1836_v20  ;;  %v332_v51 = vrot.slane %v313_v44, 4  ;;  %v329_v53 = vperm.slane %v321_v52, %v1829_v11  ;;  %v344_v54 = vrot.slane %v317_v49, 4 }
  0x3e   : > { %455 = vrot.lane.b32.xlu1 %v397_v46, %s1637_s1  ;;  %v412_v55 = vrot.slane %v397_v46, 4  ;;  %v330_v57 = vrot.slane %v325_v45, 4  ;;  %v405_v0 = vperm.slane %v399_v58, %v1836_v20  ;;  %v400_v6 = vrot.slane %v373_v43, 4  ;;  %s1652_s1 = smov 19  }
  0x3f   : > { %447 = vrot.lane.b32.xlu0 %v393_v50, %s1638_s8  ;;  %v333_v56 = vsel %vm2202_vm1, %v325_v45, %v332_v51  ;;  %v345_v60 = vsel %vm2202_vm1, %v329_v53, %v344_v54  ;;  %v410_v4 = vrot.slane %v393_v50, 4  ;;  %v342_v10 = vrot.slane %v329_v53, 4  ;;  %s1653_s8 = smov 109  }
  0x40   : > { %v413_v59 = vsel %vm2202_vm1, 0.0, %v412_v55  ;;  %v331_v61 = vsel %vm2202_vm1, %v330_v57, %v313_v44  ;;  %v341_v62 = vperm.slane %v333_v56, %v1836_v20  ;;  %v353_v1 = vperm.slane %v345_v60, %v1836_v20 }
  0x41   : > { %459 = vrot.lane.b32.xlu2 %v413_v59, %s1639_s11  ;;  %v1869_v63 = vperm.slane %v331_v61, %v1836_v20  ;;  %v414_v7 = vrot.slane %v405_v0, 4  ;;  %v411_v8 = vsel %vm2202_vm1, 0.0, %v410_v4  ;;  %v401_v12 = vsel %vm2202_vm1, %v385_v31, %v400_v6  ;;  %s1654_s11 = smov 92  }
  0x42   : > { %v360_v5 = vrot.slane %v353_v1, 4  ;;  %v409_v14 = vperm.slane %v401_v12, %v1836_v20  ;;  %v356_v15 = vrot.slane %v341_v62, 4  ;;  %v343_v16 = vsel %vm2202_vm1, %v342_v10, %v317_v49 }
  0x43   : > { %v354_v2 = vrot.slane %v1869_v63, 4  ;;  %v415_v13 = vsel %vm2202_vm1, 0.0, %v414_v7  ;;  %v349_v18 = vperm.slane %v343_v16, %v1836_v20  ;;  %vm493_vm2 = vcmask 277504  }
  0x44   : > { %v361_v9 = vsel %vm2202_vm1, 0.0, %v360_v5  ;;  %v416_v17 = vrot.slane %v409_v14, 4  ;;  %v357_v19 = vsel %vm2202_vm1, 0.0, %v356_v15  ;;  %vm495_vm3 = vcmask 424960  }
  0x45   : > { %v355_v3 = vsel %vm2202_vm1, 0.0, %v354_v2  ;;  %v358_v22 = vrot.slane %v349_v18, 4  ;;  %vm497_vm4 = vcmask 572416   ;;  %vm499_vm5 = vcmask 719872  }
  0x46   : > { %423 = vrot.lane.b32.xlu1 %v341_v62, %s1640_s18  ;;  %v417_v21 = vsel %vm2202_vm1, 0.0, %v416_v17  ;;  %vm501_vm6 = vcmask 867328   ;;  %vm503_vm7 = vcmask 1014784   ;;  %vm505_vm8 = vcmask 113664   ;;  %s1655_s18 = smov 91  }
  0x47   : > { %463 = vrot.lane.b32.xlu0 %v405_v0, %s1641_s12  ;;  %v359_v23 = vsel %vm2202_vm1, 0.0, %v358_v22  ;;  %vm478_vm9 = vcmask 146432   ;;  %vm2204_vm10 = vcmask 293888   ;;  %vm482_vm11 = vcmask 441344   ;;  %s1656_s12 = smov 110  }
  0x48   : > { %vm484_vm12 = vcmask 588800   ;;  %vm486_vm13 = vcmask 736256   ;;  %vm488_vm14 = vcmask 883712   ;;  %vm490_vm15 = vcmask 1031168  }
  0x49   : > { %419 = vrot.lane.b32.xlu2 %v355_v3, %s1642_s13  ;;  %s1657_s13 = smov 127  }
  0x4e   : > { %451 = vrot.lane.b32.xlu1 %v411_v8, %s1643_s15  ;;  %s1664_s15 = smov 94  }
  0x4f   : > { %443 = vrot.lane.b32.xlu0 %v361_v9, %s1644_s7 }
  0x51   : > { %467 = vrot.lane.b32.xlu2 %v415_v13, %s1645_s14  ;;  %s1665_s14 = smov 4  }
  0x56   : > { %471 = vrot.lane.b32.xlu1 %v409_v14, %s1646_s16  ;;  %s1666_s16 = smov 22  }
  0x57   : > { %427 = vrot.lane.b32.xlu0 %v357_v19, %s1647_s26  ;;  %s1667_s26 = smov 76  }
  0x59   : > { %475 = vrot.lane.b32.xlu2 %v417_v21, %s1648_s20  ;;  %s1668_s20 = smov 58  }
  0x5e   : > { %435 = vrot.lane.b32.xlu1 %v359_v23, %s1649_s17 }
  0x5f   : > { %431 = vrot.lane.b32.xlu0 %v349_v18, %s1650_s19  ;;  %s1670_s19 = smov 38  }
  0x61   : > { %439 = vrot.lane.b32.xlu2 %v353_v1, %s1651_s23 }
  0x9b   : > { %v460_v24 = vpop.permute.xlu2 %459 }
  0xa3   : > { %v420_v27 = vpop.permute.xlu2 %419 }
  0xa4   : > { %v479_v44 = vsel %vm478_vm9, %v1869_v63, %v420_v27  ;;  %v1658_v27 = vmov 0   ;;  %vm559_vm9 = vcmask 900096  }
  0xa5   : > { %1451 = vset.pattern.permute.xlu2 %v1658_v27  ;;  %1487 = vset.pattern.permute.xlu0 %v1658_v27 }
  0xab   : > { %v468_v30 = vpop.permute.xlu2 %467 }
  0xb0   : > { %v456_v25 = vpop.permute.xlu1 %455 }
  0xb1   : > { %v448_v26 = vpop.permute.xlu0 %447 }
  0xb3   : > { %v476_v38 = vpop.permute.xlu2 %475 }
  0xb8   : > { %v424_v28 = vpop.permute.xlu1 %423 }
  0xb9   : > { %v464_v29 = vpop.permute.xlu0 %463  ;;  %v481_v45 = vsel %vm2204_vm10, %v479_v44, %v424_v28 }
  0xbb   : > { %v440_v49 = vpop.permute.xlu2 %439 }
  0xc0   : > { %v452_v31 = vpop.permute.xlu1 %451 }
  0xc1   : > { %v444_v32 = vpop.permute.xlu0 %443 }
  0xc2   : > { %v492_v33 = vsel %vm2201_vm0, %v444_v32, %v448_v26 }
  0xc3   : > { %v494_v34 = vsel %vm493_vm2, %v492_v33, %v452_v31  ;;  %vm516_vm2 = vcmask 154624  }
  0xc4   : > { %v496_v35 = vsel %vm495_vm3, %v494_v34, %v456_v25  ;;  %vm523_vm3 = vcmask 416768   ;;  %v634_v25 = vld [vmem:[%s2196_s3] sm:$0xf] }
  0xc5   : > { %v498_v36 = vsel %vm497_vm4, %v496_v35, %v460_v24  ;;  %vm620_vm4 = vcmask 1043456  }
  0xc6   : > { %v500_v37 = vsel %vm499_vm5, %v498_v36, %v464_v29  ;;  %vm606_vm5 = vcmask 744448  }
  0xc7   : > { %v502_v39 = vsel %vm501_vm6, %v500_v37, %v468_v30  ;;  %vm594_vm6 = vcmask 752640  }
  0xc8   : > { %v472_v40 = vpop.permute.xlu1 %471 }
  0xc9   : > { %v428_v41 = vpop.permute.xlu0 %427  ;;  %v504_v42 = vsel %vm503_vm7, %v502_v39, %v472_v40  ;;  %v506_v43 = vsel %vm505_vm8, %v472_v40, %v476_v38  ;;  %vm571_vm7 = vcmask 891904   ;;  %vm536_vm8 = vcmask 1039360  }
  0xca   : > { %512 = vrot.lane.b32.xlu0 %v504_v42, %s1652_s1  ;;  %514 = vrot.lane.b32.xlu1 %v506_v43, %s1652_s1  ;;  %v483_v47 = vsel %vm482_vm11, %v481_v45, %v428_v41  ;;  %vm2203_vm11 = vcmask 257024  }
  0xd0   : > { %v436_v46 = vpop.permute.xlu1 %435 }
  0xd1   : > { %v432_v48 = vpop.permute.xlu0 %431 }
  0xd2   : > { %v485_v50 = vsel %vm484_vm12, %v483_v47, %v432_v48 }
  0xd3   : > { %v487_v51 = vsel %vm486_vm13, %v485_v50, %v436_v46 }
  0xd4   : > { %v489_v52 = vsel %vm488_vm14, %v487_v51, %v440_v49  ;;  %v633_v49 = vld [vmem:[%s2195_s2] sm:$0xf] }
  0xd5   : > { %v491_v53 = vsel %vm490_vm15, %v489_v52, %v444_v32 }
  0xd6   : > { %510 = vrot.lane.b32.xlu2 %v491_v53, %s1652_s1 }
 0x130   : > { %v511_v54 = vpop.permute.xlu2 %510 }
 0x131   : > { %v1898_v55 = vsel %vm516_vm2, 0.0, %v511_v54 }
 0x132   : > { %612 = vrot.lane.b32.xlu2 %v1898_v55, %s1649_s17  ;;  %v527_v0 = vrot.slane %v1898_v55, 4 }
 0x13c   : > { %v513_v56 = vpop.permute.xlu0 %512  ;;  %v515_v57 = vpop.permute.xlu1 %514 }
 0x13d   : > { %v1903_v58 = vsel %vm516_vm2, %v511_v54, %v513_v56  ;;  %v518_v59 = vsel %vm516_vm2, %v513_v56, %v515_v57 }
 0x13e   : > { %567 = vrot.lane.b32.xlu2 %v1903_v58, %s1653_s8  ;;  %590 = vrot.lane.b32.xlu1 %v1903_v58, %s1654_s11  ;;  %v1913_v60 = vsel %vm523_vm3, %v518_v59, 0.0  ;;  %v528_v62 = vrot.slane %v1903_v58, 4 }
 0x13f   : > { %614 = vrot.lane.b32.xlu0 %v1903_v58, %s1649_s17  ;;  %v1416_v61 = vpack.i.bf16 %v1898_v55, %v1913_v60  ;;  %v529_v63 = vrot.slane %v1913_v60, 4 }
 0x141   : > { %v1436_v1 = vpack.i.bf16 %v527_v0, %v529_v63 }
 0x146   : > { %1417 = vrot.lane.b32.xlu1 %v1416_v61, %s1654_s11  ;;  %602 = vrot.lane.b32.xlu2 %v528_v62, %s1655_s18 }
 0x147   : > { %616 = vrot.lane.b32.xlu0 %v1913_v60, %s1649_s17 }
 0x14e   : > { %1437 = vrot.lane.b32.xlu1 %v1436_v1, %s1651_s23  ;;  %1432 = vrot.lane.b32.xlu2 %v1436_v1, %s1655_s18 }
 0x14f   : > { %1422 = vrot.lane.b32.xlu0 %v1416_v61, %s1653_s8 }
 0x156   : > { %1442 = vrot.lane.b32.xlu1 %v1436_v1, %s1656_s12  ;;  %544 = vrot.lane.b32.xlu2 %v1903_v58, %s1644_s7 }
 0x157   : > { %1427 = vrot.lane.b32.xlu0 %v1416_v61, %s1644_s7 }
 0x15e   : > { %1447 = vrot.lane.b32.xlu1 %v1436_v1, %s1657_s13  ;;  %637 = vperm.xlu2 %1451, %v634_v25  }
 0x15f   : > { %579 = vrot.lane.b32.xlu0 %v528_v62, %s1651_s23 }
 0x166   : > { %532 = vrot.lane.b32.xlu1 %v528_v62, %s1657_s13 }
 0x167   : > { %555 = vrot.lane.b32.xlu0 %v528_v62, %s1656_s12 }
 0x18c   : > { %v613_v2 = vpop.permute.xlu2 %612 }
 0x198   : > { %v568_v3 = vpop.permute.xlu2 %567 }
 0x1a0   : > { %v603_v4 = vpop.permute.xlu2 %602 }
 0x1a8   : > { %v1433_v8 = vpop.permute.xlu2 %1432 }
 0x1a9   : > { %v1435_v9 = vunpack.i.h.bf16 %v1433_v8  ;;  %v1434_v10 = vunpack.i.l.bf16 %v1433_v8 }
 0x1ab   : > { %v607_v17 = vsel %vm606_vm5, %v1435_v9, %v603_v4  ;;  %v608_v22 = vsel %vm606_vm5, %v603_v4, %v1434_v10  ;;  %v295_v4 = vld [vmem:[#allocation5] sm:$0x7] }
 0x1ac   : > { %v1980_v9 = vperm.slane %v295_v4, 0 }
 0x1b0   : > { %v591_v5 = vpop.permute.xlu1 %590  ;;  %v545_v51 = vpop.permute.xlu2 %544 }
 0x1b1   : > { %v615_v6 = vpop.permute.xlu0 %614 }
 0x1b2   : > { %v618_v7 = vsel %vm486_vm13, %v613_v2, %v615_v6 }
 0x1b3   : > { %1299 = vmatpush.msk.msra.mxu0 %vm620_vm4, %v618_v7 }
 0x1b8   : > { %v1418_v12 = vpop.permute.xlu1 %1417 }
 0x1b9   : > { %v1420_v13 = vunpack.i.h.bf16 %v1418_v12  ;;  %v1419_v14 = vunpack.i.l.bf16 %v1418_v12  ;;  %v617_v15 = vpop.permute.xlu0 %616 }
 0x1ba   : > { %1303 = vmatpush.msk.msra.mxu2 %vm620_vm4, %v617_v15  ;;  %v619_v16 = vsel %vm486_vm13, %v615_v6, %v617_v15  ;;  %v1978_v6 = vperm.slane %v295_v4, 2 }
 0x1bb   : > { %1301 = vmatpush.msk.msra.mxu1 %vm620_vm4, %v619_v16  ;;  %v632_v18 = vsel %vm620_vm4, %v1419_v14, %v1434_v10  ;;  %v595_v19 = vsel %vm594_vm6, %v1420_v13, %v591_v5  ;;  %v596_v21 = vsel %vm594_vm6, %v591_v5, %v1419_v14  ;;  %v638_v5 = vpop.permute.xlu2 %637  ;;  %v1982_v10 = vperm.slane %v295_v4, 1 }
 0x1bc   : > { %701 = vmatpush.msra.mxu2 %v632_v18  ;;  %v630_v23 = vsel %vm620_vm4, %v595_v19, %v607_v17  ;;  %v631_v24 = vsel %vm620_vm4, %v596_v21, %v608_v22 }
 0x1bd   : > { %661 = vmatpush.msra.mxu0 %v630_v23  ;;  %681 = vmatpush.msra.mxu1 %v631_v24 }
 0x1c0   : > { %v1438_v26 = vpop.permute.xlu1 %1437 }
 0x1c1   : > { %v1439_v28 = vunpack.i.l.bf16 %v1438_v26  ;;  %v1423_v29 = vpop.permute.xlu0 %1422  ;;  %v1440_v38 = vunpack.i.h.bf16 %v1438_v26 }
 0x1c2   : > { %v1424_v30 = vunpack.i.l.bf16 %v1423_v29  ;;  %v1425_v37 = vunpack.i.h.bf16 %v1423_v29 }
 0x1c4   : > { %v629_v31 = vsel %vm620_vm4, %v1424_v30, %v1439_v28  ;;  %v572_v44 = vsel %vm571_vm7, %v1425_v37, %v568_v3  ;;  %v573_v45 = vsel %vm571_vm7, %v568_v3, %v1424_v30 }
 0x1c5   : > { %702 = vmatpush.msra.mxu2 %v629_v31 }
 0x1c8   : > { %v1443_v32 = vpop.permute.xlu1 %1442 }
 0x1c9   : > { %v1444_v33 = vunpack.i.l.bf16 %v1443_v32  ;;  %v1428_v34 = vpop.permute.xlu0 %1427  ;;  %v1445_v52 = vunpack.i.h.bf16 %v1443_v32 }
 0x1ca   : > { %v1429_v35 = vunpack.i.l.bf16 %v1428_v34  ;;  %v1430_v50 = vunpack.i.h.bf16 %v1428_v34 }
 0x1cc   : > { %v626_v36 = vsel %vm620_vm4, %v1429_v35, %v1444_v33  ;;  %v548_v57 = vsel %vm490_vm15, %v1430_v50, %v545_v51  ;;  %v549_v59 = vsel %vm490_vm15, %v545_v51, %v1429_v35 }
 0x1cd   : > { %703 = vmatpush.msra.mxu2 %v626_v36 }
 0x1d0   : > { %v1448_v39 = vpop.permute.xlu1 %1447 }
 0x1d1   : > { %v1449_v40 = vunpack.i.l.bf16 %v1448_v39  ;;  %v580_v41 = vpop.permute.xlu0 %579  ;;  %v1450_v53 = vunpack.i.h.bf16 %v1448_v39 }
 0x1d2   : > { %v583_v42 = vsel %vm488_vm14, %v1440_v38, %v580_v41  ;;  %v584_v43 = vsel %vm488_vm14, %v580_v41, %v1439_v28 }
 0x1d3   : > { %v627_v46 = vsel %vm620_vm4, %v572_v44, %v583_v42  ;;  %v628_v47 = vsel %vm620_vm4, %v573_v45, %v584_v43  ;;  %v623_v48 = vsel %vm620_vm4, %v1913_v60, %v1449_v40 }
 0x1d4   : > { %662 = vmatpush.msra.mxu0 %v627_v46  ;;  %682 = vmatpush.msra.mxu1 %v628_v47 }
 0x1d5   : > { %704 = vmatpush.msra.mxu2 %v623_v48 }
 0x1d6   : > { %1304 = vmatmul.msk.f32.vlgmr.msra.gmra.mxu2 %vm2204_vm10, %v633_v49 }
 0x1d8   : > { %v533_v54 = vpop.permute.xlu1 %532 }
 0x1d9   : > { %v556_v56 = vpop.permute.xlu0 %555  ;;  %v537_v60 = vsel %vm536_vm8, %v1450_v53, %v533_v54  ;;  %v538_v61 = vsel %vm536_vm8, %v533_v54, %v1449_v40 }
 0x1da   : > { %v560_v62 = vsel %vm559_vm9, %v1445_v52, %v556_v56  ;;  %v561_v63 = vsel %vm559_vm9, %v556_v56, %v1444_v33  ;;  %v621_v2 = vsel %vm620_vm4, %v1898_v55, %v537_v60  ;;  %v622_v3 = vsel %vm620_vm4, %v1903_v58, %v538_v61 }
 0x1db   : > { %v624_v0 = vsel %vm620_vm4, %v548_v57, %v560_v62  ;;  %v625_v1 = vsel %vm620_vm4, %v549_v59, %v561_v63 }
 0x1dc   : > { %663 = vmatpush.msra.mxu0 %v624_v0  ;;  %683 = vmatpush.msra.mxu1 %v625_v1 }
 0x1de   : > { %664 = vmatpush.msra.mxu0 %v621_v2  ;;  %684 = vmatpush.msra.mxu1 %v622_v3 }
 0x1df   : > { %1300 = vmatmul.msk.f32.vlgmr.msra.gmra.mxu0 %vm2204_vm10, %v633_v49  ;;  %1302 = vmatmul.msk.f32.vlgmr.msra.gmra.mxu1 %vm2204_vm10, %v633_v49 }
 0x259   : > { %v706_v7 = vpop.f32.mrf.mxu2 }
 0x25a   : > { %v707_v8 = vadd.f32 %v706_v7, %v638_v5 }
 0x25c   : > { %v666_v55 = vpop.f32.mrf.mxu0  ;;  %v686_v12 = vpop.f32.mrf.mxu1  ;;  %v718_v58 = vmul.f32 %v1978_v6, %v707_v8 }
 0x25d   : > { %v667_v13 = vadd.f32 %v666_v55, %v638_v5  ;;  %v687_v14 = vadd.f32 %v686_v12, %v638_v5 }
 0x25e   : > { %v730_v17 = vmul.f32 %v718_v58, %v718_v58  ;;  %v723_v24 = vsel %vm2203_vm11, %v718_v58, 0.0  ;;  %v889_v58 = vld [vmem:[%s2198_s5] sm:$0xf] }
 0x25f   : > { %v716_v15 = vmul.f32 %v1980_v9, %v667_v13  ;;  %v717_v16 = vmul.f32 %v1982_v10, %v687_v14 }
 0x260   : > { %v734_v29 = vsel %vm2203_vm11, %v730_v17, 0.0 }
 0x261   : > { %v728_v18 = vmul.f32 %v716_v15, %v716_v15  ;;  %v729_v19 = vmul.f32 %v717_v16, %v717_v16  ;;  %v719_v21 = vsel %vm620_vm4, %v716_v15, 0.0  ;;  %v720_v22 = vsel %vm620_vm4, %v717_v16, 0.0 }
 0x262   : > { %v721_v23 = vadd.f32 %v720_v22, %v719_v21 }
 0x263   : > { %v731_v25 = vsel %vm620_vm4, %v728_v18, 0.0  ;;  %v732_v26 = vsel %vm620_vm4, %v729_v19, 0.0 }
 0x264   : > { %v724_v27 = vadd.f32 %v723_v24, %v721_v23  ;;  %v733_v28 = vadd.f32 %v732_v26, %v731_v25 }
 0x266   : > { %725 = vadd.xlane.f32.xlu0 %v724_v27  ;;  %v735_v30 = vadd.f32 %v734_v29, %v733_v28 }
 0x268   : > { %736 = vadd.xlane.f32.xlu1 %v735_v30 }
 0x2d9   : > { %v726_v31 = vpop.xlane.xlu0 %725 }
 0x2da   : > { %v727_v32 = vmul.f32 0.00390625, %v726_v31 }
 0x2db   : > { %v737_v33 = vpop.xlane.xlu1 %736 }
 0x2dc   : > { %v738_v34 = vmul.f32 0.00390625, %v737_v33  ;;  %v739_v35 = vmul.f32 %v727_v32, %v727_v32  ;;  %v741_v44 = vsub.f32 %v667_v13, %v727_v32  ;;  %v742_v46 = vsub.f32 %v687_v14, %v727_v32 }
 0x2dd   : > { %v743_v53 = vsub.f32 %v707_v8, %v727_v32 }
 0x2de   : > { %v740_v36 = vsub.f32 %v738_v34, %v739_v35 }
 0x2e0   : > { %v744_v37 = vadd.f32 1e-05, %v740_v36 }
 0x2e2   : > { %1488 = vrsqrt.f32 %v744_v37  ;;  %vm751_vm0 = vweird.f32 %v744_v37 }
 0x2e8   : > { %v1489_v38 = vpop.eup %1488 }
 0x2e9   : > { %v746_v39 = vmul.f32 %v1489_v38, %v744_v37  ;;  %vm752_vm12 = vweird.f32 %v1489_v38 }
 0x2ea   : > { %vm753_vm1 = vmor %vm751_vm0, %vm752_vm12 }
 0x2eb   : > { %v747_v40 = vmul.f32 %v1489_v38, %v746_v39 }
 0x2ed   : > { %v748_v41 = vmul.f32 0.5, %v747_v40 }
 0x2ef   : > { %v749_v42 = vsub.f32 1.5, %v748_v41 }
 0x2f1   : > { %v750_v43 = vmul.f32 %v1489_v38, %v749_v42 }
 0x2f3   : > { %v754_v45 = vsel %vm753_vm1, %v1489_v38, %v750_v43  ;;  %vm2215_vm1 = vcmask 293888  }
 0x2f4   : > { %v755_v47 = vmul.f32 %v754_v45, %v741_v44  ;;  %v756_v49 = vmul.f32 %v754_v45, %v742_v46  ;;  %v757_v56 = vmul.f32 %v754_v45, %v743_v53 }
 0x2f6   : > { %vm758_vm11 = vcmp.ge.f32.partialorder %v755_v47, 0.0  ;;  %v761_v48 = vmul.f32 0.2, %v755_v47  ;;  %v762_v52 = vmul.f32 0.2, %v756_v49  ;;  %vm759_vm10 = vcmp.ge.f32.partialorder %v756_v49, 0.0 }
 0x2f7   : > { %v763_v59 = vmul.f32 0.2, %v757_v56  ;;  %vm760_vm0 = vcmp.ge.f32.partialorder %v757_v56, 0.0 }
 0x2f8   : > { %v764_v50 = vsel %vm758_vm11, %v755_v47, %v761_v48  ;;  %v765_v54 = vsel %vm759_vm10, %v756_v49, %v762_v52  ;;  %vm2216_vm10 = vmmov %vm2215_vm1 }
 0x2f9   : > { %v767_v51 = vmul.f32 %v764_v50, %v1980_v9  ;;  %v768_v57 = vmul.f32 %v765_v54, %v1982_v10  ;;  %v766_v60 = vsel %vm760_vm0, %v757_v56, %v763_v59  ;;  %v888_v59 = vld [vmem:[%s2197_s4] sm:$0xf]  ;;  %vm1055_vm0 = vcmask 31744  }
 0x2fa   : > { %v769_v61 = vmul.f32 %v766_v60, %v1978_v6 }
 0x2fb   : > { %773 = vrot.lane.b32.xlu2 %v767_v51, %s1652_s1 }
 0x303   : > { %775 = vrot.lane.b32.xlu2 %v768_v57, %s1652_s1 }
 0x30b   : > { %777 = vrot.lane.b32.xlu2 %v769_v61, %s1652_s1  ;;  %s1660_s1 = smov 74  }
 0x355   : > { %v774_v62 = vpop.permute.xlu2 %773 }
 0x356   : > { %v2000_v63 = vsel %vm516_vm2, 0.0, %v774_v62 }
 0x357   : > { %868 = vrot.lane.b32.xlu2 %v2000_v63, %s1649_s17  ;;  %v788_v8 = vrot.slane %v2000_v63, 4 }
 0x35d   : > { %v776_v0 = vpop.permute.xlu2 %775 }
 0x35e   : > { %v2005_v1 = vsel %vm516_vm2, %v774_v62, %v776_v0 }
 0x35f   : > { %870 = vrot.lane.b32.xlu2 %v2005_v1, %s1649_s17  ;;  %v1457_v2 = vpack.i.bf16 %v2005_v1, %v2000_v63  ;;  %v789_v7 = vrot.slane %v2005_v1, 4 }
 0x361   : > { %1458 = vrot.lane.b32.xlu1 %v1457_v2, %s1653_s8  ;;  %v1467_v55 = vpack.i.bf16 %v789_v7, %v788_v8 }
 0x365   : > { %v778_v3 = vpop.permute.xlu2 %777 }
 0x366   : > { %v780_v4 = vsel %vm516_vm2, %v776_v0, %v778_v3 }
 0x367   : > { %v2014_v5 = vsel %vm523_vm3, %v780_v4, 0.0  ;;  %1453 = vrot.lane.b32.xlu2 %v1457_v2, %s1654_s11 }
 0x368   : > { %850 = vrot.lane.b32.xlu0 %v2014_v5, %s1654_s11  ;;  %v790_v12 = vrot.slane %v2014_v5, 4 }
 0x369   : > { %828 = vrot.lane.b32.xlu1 %v2014_v5, %s1653_s8  ;;  %s1661_s8 = smov 2  }
 0x36f   : > { %1463 = vrot.lane.b32.xlu2 %v1457_v2, %s1644_s7 }
 0x370   : > { %1468 = vrot.lane.b32.xlu0 %v1467_v55, %s1655_s18 }
 0x371   : > { %1483 = vrot.lane.b32.xlu1 %v1467_v55, %s1657_s13 }
 0x377   : > { %872 = vrot.lane.b32.xlu2 %v2014_v5, %s1649_s17  ;;  %s1317_s17 = sshll.u32 %s1730_s25, 6 }
 0x378   : > { %1478 = vrot.lane.b32.xlu0 %v1467_v55, %s1656_s12 }
 0x379   : > { %817 = vrot.lane.b32.xlu1 %v790_v12, %s1656_s12 }
 0x37f   : > { %1473 = vrot.lane.b32.xlu2 %v1467_v55, %s1651_s23 }
 0x380   : > { %839 = vrot.lane.b32.xlu0 %v790_v12, %s1651_s23  ;;  %s1659_s23 = smov 20  }
 0x387   : > { %861 = vrot.lane.b32.xlu2 %v790_v12, %s1655_s18  ;;  %s1662_s18 = smov 56  }
 0x388   : > { %795 = vrot.lane.b32.xlu0 %v790_v12, %s1657_s13  ;;  %s1663_s13 = smov 112  }
 0x38f   : > { %806 = vrot.lane.b32.xlu2 %v2014_v5, %s1644_s7  ;;  %s1671_s7 = smov 40  }
 0x397   : > { %892 = vperm.xlu2 %1451, %v889_v58  }
 0x3b1   : > { %v869_v13 = vpop.permute.xlu2 %868 }
 0x3b9   : > { %v871_v14 = vpop.permute.xlu2 %870 }
 0x3ba   : > { %v874_v15 = vsel %vm486_vm13, %v869_v13, %v871_v14 }
 0x3bb   : > { %1305 = vmatpush.msk.msra.mxu3 %vm620_vm4, %v874_v15 }
 0x3c1   : > { %v1454_v16 = vpop.permute.xlu2 %1453 }
 0x3c2   : > { %v1456_v25 = vunpack.i.h.bf16 %v1454_v16  ;;  %v1455_v26 = vunpack.i.l.bf16 %v1454_v16 }
 0x3c4   : > { %v852_v36 = vsel %vm594_vm6, %v1455_v26, %v1456_v25 }
 0x3c9   : > { %v1464_v17 = vpop.permute.xlu2 %1463 }
 0x3ca   : > { %v1466_v46 = vunpack.i.h.bf16 %v1464_v17  ;;  %v1465_v47 = vunpack.i.l.bf16 %v1464_v17 }
 0x3cc   : > { %v808_v53 = vsel %vm490_vm15, %v1465_v47, %v1466_v46 }
 0x3d1   : > { %v873_v18 = vpop.permute.xlu2 %872 }
 0x3d2   : > { %1309 = vmatpush.msk.msrb.mxu1 %vm620_vm4, %v873_v18  ;;  %v875_v19 = vsel %vm486_vm13, %v871_v14, %v873_v18  ;;  %vm2217_vm13 = vmmov %vm2215_vm1 }
 0x3d3   : > { %v1459_v21 = vpop.permute.xlu1 %1458  ;;  %1307 = vmatpush.msk.msrb.mxu0 %vm620_vm4, %v875_v19 }
 0x3d4   : > { %v1461_v32 = vunpack.i.h.bf16 %v1459_v21  ;;  %v1460_v33 = vunpack.i.l.bf16 %v1459_v21 }
 0x3d6   : > { %v830_v44 = vsel %vm571_vm7, %v1460_v33, %v1461_v32 }
 0x3d9   : > { %v1474_v22 = vpop.permute.xlu2 %1473 }
 0x3da   : > { %v851_v23 = vpop.permute.xlu0 %850  ;;  %v1476_v27 = vunpack.i.h.bf16 %v1474_v22  ;;  %v1475_v28 = vunpack.i.l.bf16 %v1474_v22 }
 0x3db   : > { %v829_v24 = vpop.permute.xlu1 %828  ;;  %v853_v37 = vsel %vm594_vm6, %v1456_v25, %v851_v23 }
 0x3dc   : > { %v841_v40 = vsel %vm488_vm14, %v1475_v28, %v1476_v27  ;;  %v831_v2 = vsel %vm571_vm7, %v1461_v32, %v829_v24  ;;  %vm1029_vm7 = vcmask 15360  }
 0x3dd   : > { %v882_v45 = vsel %vm620_vm4, %v830_v44, %v841_v40 }
 0x3e1   : > { %v862_v29 = vpop.permute.xlu2 %861 }
 0x3e2   : > { %v1469_v30 = vpop.permute.xlu0 %1468  ;;  %v887_v31 = vsel %vm620_vm4, %v851_v23, %v862_v29 }
 0x3e3   : > { %v1471_v34 = vunpack.i.h.bf16 %v1469_v30  ;;  %v1470_v35 = vunpack.i.l.bf16 %v1469_v30  ;;  %956 = vmatpush.msrb.mxu1 %v887_v31  ;;  %v1484_v41 = vpop.permute.xlu1 %1483 }
 0x3e4   : > { %v1486_v48 = vunpack.i.h.bf16 %v1484_v41  ;;  %v1485_v49 = vunpack.i.l.bf16 %v1484_v41 }
 0x3e5   : > { %v863_v38 = vsel %vm606_vm5, %v1470_v35, %v1471_v34  ;;  %v864_v39 = vsel %vm606_vm5, %v1471_v34, %v862_v29  ;;  %vm2220_vm5 = vcmask 1047556  }
 0x3e6   : > { %v885_v42 = vsel %vm620_vm4, %v852_v36, %v863_v38  ;;  %v886_v43 = vsel %vm620_vm4, %v853_v37, %v864_v39  ;;  %v797_v56 = vsel %vm536_vm8, %v1485_v49, %v1486_v48  ;;  %vm2221_vm6 = vmmov %vm2220_vm5 }
 0x3e7   : > { %916 = vmatpush.msra.mxu3 %v885_v42  ;;  %936 = vmatpush.msrb.mxu0 %v886_v43  ;;  %v876_v61 = vsel %vm620_vm4, %v2000_v63, %v797_v56  ;;  %vm2224_vm11 = vmmov %vm2220_vm5 }
 0x3e8   : > { %vm2225_vm12 = vmmov %vm2220_vm5 }
 0x3e9   : > { %917 = vmatpush.msra.mxu3 %v882_v45  ;;  %v807_v62 = vpop.permute.xlu2 %806 }
 0x3ea   : > { %v1479_v50 = vpop.permute.xlu0 %1478  ;;  %v809_v55 = vsel %vm490_vm15, %v1466_v46, %v807_v62 }
 0x3eb   : > { %v1481_v51 = vunpack.i.h.bf16 %v1479_v50  ;;  %v1480_v52 = vunpack.i.l.bf16 %v1479_v50  ;;  %v818_v60 = vpop.permute.xlu1 %817 }
 0x3ec   : > { %v881_v63 = vsel %vm620_vm4, %v807_v62, %v818_v60 }
 0x3ed   : > { %v819_v54 = vsel %vm559_vm9, %v1480_v52, %v1481_v51  ;;  %v820_v3 = vsel %vm559_vm9, %v1481_v51, %v818_v60  ;;  %vm2223_vm9 = vmmov %vm2220_vm5 }
 0x3ee   : > { %v879_v57 = vsel %vm620_vm4, %v808_v53, %v819_v54  ;;  %v880_v12 = vsel %vm620_vm4, %v809_v55, %v820_v3 }
 0x3ef   : > { %918 = vmatpush.msra.mxu3 %v879_v57 }
 0x3f1   : > { %919 = vmatpush.msra.mxu3 %v876_v61  ;;  %v893_v16 = vpop.permute.xlu2 %892 }
 0x3f2   : > { %v840_v0 = vpop.permute.xlu0 %839  ;;  %1306 = vmatmul.msk.f32.vlgmr.msra.gmra.mxu3 %vm2215_vm1, %v888_v59  ;;  %vm2226_vm1 = vmmov %vm2220_vm5 }
 0x3f3   : > { %v842_v4 = vsel %vm488_vm14, %v1476_v27, %v840_v0  ;;  %v884_v7 = vsel %vm620_vm4, %v829_v24, %v840_v0  ;;  %vm2218_vm14 = vcmask 257024  }
 0x3f4   : > { %957 = vmatpush.msrb.mxu1 %v884_v7  ;;  %v883_v8 = vsel %vm620_vm4, %v831_v2, %v842_v4  ;;  %vm2219_vm15 = vmmov %vm2218_vm14 }
 0x3f5   : > { %937 = vmatpush.msrb.mxu0 %v883_v8 }
 0x3f6   : > { %958 = vmatpush.msrb.mxu1 %v881_v63 }
 0x3f7   : > { %938 = vmatpush.msrb.mxu0 %v880_v12 }
 0x3fa   : > { %v796_v58 = vpop.permute.xlu0 %795 }
 0x3fb   : > { %v798_v13 = vsel %vm536_vm8, %v1486_v48, %v796_v58  ;;  %v878_v14 = vsel %vm620_vm4, %v2014_v5, %v796_v58  ;;  %vm2222_vm8 = vmmov %vm2220_vm5 }
 0x3fc   : > { %959 = vmatpush.msrb.mxu1 %v878_v14  ;;  %v877_v15 = vsel %vm620_vm4, %v2005_v1, %v798_v13 }
 0x3fd   : > { %939 = vmatpush.msrb.mxu0 %v877_v15  ;;  %1310 = vmatmul.msk.f32.vlgmr.msrb.gmra.mxu1 %vm2216_vm10, %v888_v59  ;;  %vm2227_vm10 = vmmov %vm2226_vm1 }
 0x3fe   : > { %1308 = vmatmul.msk.f32.vlgmr.msrb.gmra.mxu0 %vm2217_vm13, %v888_v59  ;;  %vm2228_vm13 = vmmov %vm2226_vm1 }
 0x475   : > { %v921_v17 = vpop.f32.mrf.mxu3 }
 0x476   : > { %v922_v18 = vadd.f32 %v921_v17, %v893_v16 }
 0x478   : > { %v964_v19 = vmul.f32 %v922_v18, %v1980_v9 }
 0x47a   : > { %v961_v21 = vpop.f32.mrf.mxu1  ;;  %v975_v25 = vmul.f32 %v964_v19, %v964_v19  ;;  %v967_v27 = vsel %vm620_vm4, %v964_v19, 0.0 }
 0x47b   : > { %v962_v22 = vadd.f32 %v961_v21, %v893_v16  ;;  %v941_v23 = vpop.f32.mrf.mxu0 }
 0x47c   : > { %v942_v24 = vadd.f32 %v941_v23, %v893_v16  ;;  %v978_v9 = vsel %vm620_vm4, %v975_v25, 0.0 }
 0x47d   : > { %v966_v5 = vmul.f32 %v962_v22, %v1978_v6 }
 0x47e   : > { %v965_v26 = vmul.f32 %v942_v24, %v1982_v10 }
 0x47f   : > { %v977_v29 = vmul.f32 %v966_v5, %v966_v5  ;;  %v970_v31 = vsel %vm2218_vm14, %v966_v5, 0.0  ;;  %vm2229_vm14 = vmmov %vm2226_vm1 }
 0x480   : > { %v976_v1 = vmul.f32 %v965_v26, %v965_v26  ;;  %v968_v28 = vsel %vm620_vm4, %v965_v26, 0.0 }
 0x481   : > { %v969_v30 = vadd.f32 %v968_v28, %v967_v27  ;;  %v981_v6 = vsel %vm2219_vm15, %v977_v29, 0.0  ;;  %vm2230_vm15 = vmmov %vm2226_vm1 }
 0x482   : > { %v979_v32 = vsel %vm620_vm4, %v976_v1, 0.0 }
 0x483   : > { %v971_v33 = vadd.f32 %v970_v31, %v969_v30  ;;  %v980_v34 = vadd.f32 %v979_v32, %v978_v9 }
 0x485   : > { %972 = vadd.xlane.f32.xlu1 %v971_v33  ;;  %v982_v35 = vadd.f32 %v981_v6, %v980_v34 }
 0x487   : > { %983 = vadd.xlane.f32.xlu0 %v982_v35 }
 0x4f8   : > { %v973_v10 = vpop.xlane.xlu1 %972 }
 0x4f9   : > { %v974_v36 = vmul.f32 0.00390625, %v973_v10 }
 0x4fa   : > { %v984_v37 = vpop.xlane.xlu0 %983 }
 0x4fb   : > { %v985_v38 = vmul.f32 0.00390625, %v984_v37  ;;  %v986_v39 = vmul.f32 %v974_v36, %v974_v36  ;;  %v988_v48 = vsub.f32 %v922_v18, %v974_v36  ;;  %v989_v51 = vsub.f32 %v942_v24, %v974_v36 }
 0x4fc   : > { %v990_v53 = vsub.f32 %v962_v22, %v974_v36 }
 0x4fd   : > { %v987_v40 = vsub.f32 %v985_v38, %v986_v39 }
 0x4ff   : > { %v991_v41 = vadd.f32 1e-05, %v987_v40 }
 0x501   : > { %1490 = vrsqrt.f32 %v991_v41  ;;  %vm998_vm3 = vweird.f32 %v991_v41 }
 0x507   : > { %v1491_v42 = vpop.eup %1490 }
 0x508   : > { %v993_v43 = vmul.f32 %v1491_v42, %v991_v41  ;;  %vm999_vm2 = vweird.f32 %v1491_v42 }
 0x509   : > { %vm1000_vm4 = vmor %vm998_vm3, %vm999_vm2 }
 0x50a   : > { %v994_v44 = vmul.f32 %v1491_v42, %v993_v43  ;;  %vm2231_vm2 = vmmov %vm2226_vm1 }
 0x50b   : > { %vm2232_vm3 = vmmov %vm2226_vm1 }
 0x50c   : > { %v995_v45 = vmul.f32 0.5, %v994_v44 }
 0x50e   : > { %v996_v46 = vsub.f32 1.5, %v995_v45 }
 0x510   : > { %v997_v47 = vmul.f32 %v1491_v42, %v996_v46 }
 0x512   : > { %v1001_v49 = vsel %vm1000_vm4, %v1491_v42, %v997_v47  ;;  %vm2233_vm4 = vmmov %vm2226_vm1 }
 0x513   : > { %v1002_v50 = vmul.f32 %v1001_v49, %v988_v48  ;;  %v1003_v52 = vmul.f32 %v1001_v49, %v989_v51  ;;  %v1004_v54 = vmul.f32 %v1001_v49, %v990_v53 }
 0x515   : > { %1021 = vrot.lane.b32.xlu0 %v1002_v50, %s1659_s23  ;;  %1012 = vrot.lane.b32.xlu1 %v1002_v50, %s1660_s1  ;;  %s1201_s23 = scalar_lea.hbm %s2199_s6, %s1317_s17 }
 0x516   : > { %1025 = vrot.lane.b32.xlu2 %v1002_v50, %s1661_s8 }
 0x51d   : > { %1006 = vrot.lane.b32.xlu0 %v1002_v50, %s1656_s12  ;;  %1015 = vrot.lane.b32.xlu1 %v1002_v50, %s1662_s18  ;;  %s1669_s12 = smov 114   ;;  %s1190_s18 = scalar_lea.sflag [#allocation4], %s1806_s28 }
 0x51e   : > { %1027 = vrot.lane.b32.xlu2 %v1003_v52, %s1661_s8  ;;  %s1204_s8 = sshll.u32 %s1201_s23, 4  ;;  %s1205_s8 = int_to_ptr.hbm [resolvable:$true] %s1204_s8 }
 0x525   : > { %1032 = vrot.lane.b32.xlu0 %v1003_v52, %s1663_s13  ;;  %1035 = vrot.lane.b32.xlu1 %v1003_v52, %s1664_s15  ;;  %s1574_s13 = sshra.s32 %s1205_s8, 4  ;;  %s1575_s13 = int_to_ptr.hbm [resolvable:$true] %s1574_s13 }
 0x526   : > { %1051 = vrot.lane.b32.xlu2 %v1003_v52, %s1665_s14  ;;  %s1576_s15 = scalar_lea.hbm %s1575_s13, 64  ;;  %p1581_p0 = scmp.lt.s32.totalorder %s1575_s13, %s2199_s6 }
 0x527   : > { %p1577_p4 = scmp.ne.s32.totalorder %s1575_s13, %s1576_s15 }
 0x529   : > { %p1578_p6 = pnand %p1577_p4, %p1761_p11 }
 0x52b   : > { %p1579_p13 = pneg %p1578_p6 }
 0x52d   : > { %1047 = vrot.lane.b32.xlu0 %v1003_v52, %s1666_s16 }
 0x52e   : > { %1053 = vrot.lane.b32.xlu2 %v1004_v54, %s1665_s14 }
 0x536   : > { %1009 = vrot.lane.b32.xlu2 %v1002_v50, %s1654_s11  ;;  %s2125_s11 = scalar_lea.vmem [#allocation7], %s1296_s30 }
 0x537   : > { %s1202_s1 = sshll.u32 %s2125_s11, 4  ;;  %s1203_s1 = int_to_ptr.vmem [resolvable:$true] %s1202_s1 }
 0x53e   : > { %1038 = vrot.lane.b32.xlu2 %v1003_v52, %s1667_s26  ;;  %s1580_s26 = scalar_lea.hbm %s2199_s6, 128 }
 0x53f   : > { %p1582_p7 = scmp.lt.s32.totalorder %s1580_s26, %s1576_s15 }
 0x541   : > { %p1583_p5 = por %p1582_p7, %p1581_p0 }
 0x543   : > { %p1584_p8 = pnand %p1583_p5, %p1579_p13 }
 0x546   : > { %1041 = vrot.lane.b32.xlu2 %v1003_v52, %s1668_s20 }
 0x54e   : > { %1058 = vrot.lane.b32.xlu2 %v1004_v54, %s1669_s12  ;;  %v1492_v54 = vld [vmem:[%s1812_s29 + $0x30] sm:$0xff] }
 0x556   : > { %1018 = vrot.lane.b32.xlu2 %v1002_v50, %s1670_s19 }
 0x55e   : > { %1044 = vrot.lane.b32.xlu2 %v1003_v52, %s1671_s7 }
 0x570   : > { %v1026_v56 = vpop.permute.xlu2 %1025 }
 0x578   : > { %v1028_v57 = vpop.permute.xlu2 %1027 }
 0x579   : > { %v1030_v24 = vsel %vm1029_vm7, %v1026_v56, %v1028_v57  ;;  %vm2236_vm7 = vmmov %vm2226_vm1 }
 0x57a   : > { %v1079_v27 = vrot.slane %v1030_v24, 4 }
 0x580   : > { %v1052_v59 = vpop.permute.xlu2 %1051 }
 0x587   : > { %v1022_v62 = vpop.permute.xlu0 %1021  ;;  %v1013_v0 = vpop.permute.xlu1 %1012 }
 0x588   : > { %v1054_v60 = vpop.permute.xlu2 %1053  ;;  %v1067_v55 = vrot.slane %v1013_v0, 4  ;;  %v1073_v17 = vrot.slane %v1022_v62, 4 }
 0x589   : > { %v1056_v36 = vsel %vm1055_vm0, %v1052_v59, %v1054_v60 }
 0x58a   : > { %v1129_v44 = vrot.slane %v1056_v36, 4 }
 0x58f   : > { %v1007_v3 = vpop.permute.xlu0 %1006  ;;  %v1016_v4 = vpop.permute.xlu1 %1015 }
 0x590   : > { %v1010_v61 = vpop.permute.xlu2 %1009  ;;  %v1068_v12 = vsel %vm2221_vm6, %v1067_v55, %v1007_v3  ;;  %v1074_v22 = vsel %vm2223_vm9, %v1073_v17, %v1016_v4  ;;  %vm2235_vm6 = vmmov %vm2226_vm1  ;;  %v1494_v4 = vld [vmem:[%s1812_s29 + $0x20] sm:$0xff] }
 0x591   : > { %v1061_v7 = vrot.slane %v1010_v61, 4  ;;  %v1072_v14 = vperm.slane %v1068_v12, %v1829_v11  ;;  %v1078_v26 = vperm.slane %v1074_v22, %v1829_v11  ;;  %vm2238_vm9 = vmmov %vm2226_vm1  ;;  %v1495_v12 = vld [vmem:[%s1812_s29] sm:$0xff]  ;;  %v1496_v22 = vld [vmem:[%s1812_s29 + $0x18] sm:$0xff] }
 0x593   : > { %v1062_v63 = vsel %vm2220_vm5, %v1061_v7, %v1002_v50  ;;  %v1085_v5 = vrot.slane %v1072_v14, 4  ;;  %v1099_v34 = vrot.slane %v1078_v26, 4  ;;  %vm2234_vm5 = vmmov %vm2226_vm1 }
 0x594   : > { %v1066_v58 = vperm.slane %v1062_v63, %v1829_v11 }
 0x596   : > { %v1087_v19 = vrot.slane %v1066_v58, 4  ;;  %v1086_v30 = vsel %vm2226_vm1, %v1085_v5, %v1066_v58 }
 0x597   : > { %v1033_v15 = vpop.permute.xlu0 %1032  ;;  %v1036_v18 = vpop.permute.xlu1 %1035  ;;  %v1092_v37 = vperm.slane %v1086_v30, %v1836_v20 }
 0x598   : > { %v1039_v2 = vpop.permute.xlu2 %1038  ;;  %v1088_v1 = vsel %vm2224_vm11, %v1072_v14, %v1087_v19 }
 0x599   : > { %v1117_v23 = vrot.slane %v1039_v2, 4  ;;  %v1096_v9 = vperm.slane %v1088_v1, %v1836_v20  ;;  %v1111_v48 = vrot.slane %v1092_v37, 4  ;;  %v1493_v2 = vld [vmem:[%s1812_s29 + $0x10] sm:$0xff] }
 0x59b   : > { %v1118_v28 = vsel %vm2225_vm12, %v1117_v23, %v1033_v15  ;;  %v1115_v41 = vrot.slane %v1096_v9, 4  ;;  %vm2240_vm12 = vmmov %vm2226_vm1 }
 0x59c   : > { %v1122_v6 = vperm.slane %v1118_v28, %v1829_v11 }
 0x59e   : > { %v1143_v45 = vrot.slane %v1122_v6, 4 }
 0x59f   : > { %v1048_v35 = vpop.permute.xlu0 %1047 }
 0x5a0   : > { %v1042_v8 = vpop.permute.xlu2 %1041 }
 0x5a1   : > { %v1123_v13 = vrot.slane %v1042_v8, 4 }
 0x5a3   : > { %v1124_v21 = vsel %vm2222_vm8, %v1123_v13, %v1036_v18  ;;  %vm2237_vm8 = vcmask 130048  }
 0x5a4   : > { %v1128_v25 = vperm.slane %v1124_v21, %v1829_v11  ;;  %vm2239_vm11 = vmmov %vm2237_vm8 }
 0x5a5   : > { %vm2241_vm0 = vmmov %vm2237_vm8 }
 0x5a6   : > { %v1141_v32 = vrot.slane %v1128_v25, 4  ;;  %v1144_v52 = vsel %vm2233_vm4, %v1128_v25, %v1143_v45  ;;  %vm2242_vm1 = vmmov %vm2241_vm0 }
 0x5a7   : > { %v1152_v55 = vperm.slane %v1144_v52, %v1836_v20  ;;  %vm2248_vm4 = vmmov %vm2241_vm0 }
 0x5a8   : > { %v1059_v16 = vpop.permute.xlu2 %1058  ;;  %v1142_v42 = vsel %vm2230_vm15, %v1141_v32, %v1122_v6  ;;  %vm2246_vm15 = vmmov %vm2231_vm2 }
 0x5a9   : > { %v1135_v29 = vrot.slane %v1059_v16, 4  ;;  %v1148_v53 = vperm.slane %v1142_v42, %v1836_v20  ;;  %v1171_v17 = vrot.slane %v1152_v55, 4 }
 0x5ab   : > { %v1136_v38 = vsel %vm2228_vm13, %v1135_v29, %v1048_v35  ;;  %v1167_v15 = vrot.slane %v1148_v53, 4  ;;  %vm2244_vm13 = vmmov %vm2231_vm2  ;;  %v1499_v29 = vld [vmem:[%s1812_s29 + $0x28] sm:$0xff] }
 0x5ac   : > { %v1140_v46 = vperm.slane %v1136_v38, %v1829_v11 }
 0x5ae   : > { %v1153_v0 = vrot.slane %v1140_v46, 4 }
 0x5b0   : > { %v1019_v31 = vpop.permute.xlu2 %1018 }
 0x5b1   : > { %v1080_v33 = vsel %vm2227_vm10, %v1079_v27, %v1019_v31  ;;  %vm2243_vm10 = vmmov %vm2231_vm2 }
 0x5b2   : > { %v1084_v10 = vperm.slane %v1080_v33, %v1829_v11 }
 0x5b4   : > { %v1097_v39 = vrot.slane %v1084_v10, 4  ;;  %v1100_v40 = vsel %vm2229_vm14, %v1084_v10, %v1099_v34  ;;  %vm2245_vm14 = vmmov %vm2231_vm2 }
 0x5b5   : > { %v1108_v43 = vperm.slane %v1100_v40, %v1836_v20 }
 0x5b6   : > { %v1098_v47 = vsel %vm2231_vm2, %v1097_v39, %v1078_v26  ;;  %v1497_v26 = vld [vmem:[%s1812_s29 + $0x8] sm:$0xff]  ;;  %vm2247_vm2 = vmmov %vm2241_vm0 }
 0x5b7   : > { %v1104_v49 = vperm.slane %v1098_v47, %v1836_v20  ;;  %v1113_v50 = vrot.slane %v1108_v43, 4  ;;  %v1116_v51 = vsel %vm2232_vm3, %v1108_v43, %v1115_v41 }
 0x5b8   : > { %v1179_v56 = vadd.f32 %v1492_v54, %v1116_v51  ;;  %v1045_v57 = vpop.permute.xlu2 %1044 }
 0x5b9   : > { %v1109_v59 = vrot.slane %v1104_v49, 4  ;;  %v1112_v60 = vsel %vm2234_vm5, %v1104_v49, %v1111_v48  ;;  %v1114_v61 = vsel %vm2235_vm6, %v1113_v50, %v1096_v9  ;;  %v1130_v62 = vsel %vm2236_vm7, %v1129_v44, %v1045_v57  ;;  %vm2249_vm5 = vmmov %vm2241_vm0 }
 0x5ba   : > { %v1175_v3 = vadd.f32 %v1493_v2, %v1112_v60  ;;  %v1177_v7 = vadd.f32 %v1494_v4, %v1114_v61  ;;  %1187 = vst.msk [vmem:[%s2125_s11 + $0x30] sm:$0xff] %vm2237_vm8, %v1179_v56  ;;  %v1134_v8 = vperm.slane %v1130_v62, %v1829_v11  ;;  %vm2250_vm6 = vmmov %vm2241_vm0 }
 0x5bb   : > { %v1110_v63 = vsel %vm2238_vm9, %v1109_v59, %v1092_v37 }
 0x5bc   : > { %v1173_v58 = vadd.f32 %v1495_v12, %v1110_v63  ;;  %1183 = vst.msk [vmem:[%s2125_s11 + $0x10] sm:$0xff] %vm2239_vm11, %v1175_v3  ;;  %v1154_v13 = vsel %vm2240_vm12, %v1153_v0, %v1134_v8  ;;  %v1155_v14 = vrot.slane %v1134_v8, 4 }
 0x5bd   : > { %1185 = vst.msk [vmem:[%s2125_s11 + $0x20] sm:$0xff] %vm2241_vm0, %v1177_v7  ;;  %v1160_v11 = vperm.slane %v1154_v13, %v1836_v20 }
 0x5be   : > { %1181 = vst.msk [vmem:[%s2125_s11] sm:$0xff] %vm2242_vm1, %v1173_v58  ;;  %v1156_v16 = vsel %vm2243_vm10, %v1140_v46, %v1155_v14 }
 0x5bf   : > { %v1164_v18 = vperm.slane %v1156_v16, %v1836_v20  ;;  %v1165_v19 = vrot.slane %v1160_v11, 4  ;;  %v1168_v21 = vsel %vm2244_vm13, %v1160_v11, %v1167_v15  ;;  %v1498_v20 = vld [vmem:[%s1812_s29 + $0x38] sm:$0xff] }
 0x5c0   : > { %v1176_v23 = vadd.f32 %v1496_v22, %v1168_v21 }
 0x5c1   : > { %v1166_v24 = vsel %vm2245_vm14, %v1165_v19, %v1148_v53  ;;  %v1169_v5 = vrot.slane %v1164_v18, 4  ;;  %v1172_v25 = vsel %vm2246_vm15, %v1164_v18, %v1171_v17 }
 0x5c2   : > { %v1174_v1 = vadd.f32 %v1497_v26, %v1166_v24  ;;  %v1180_v27 = vadd.f32 %v1498_v20, %v1172_v25  ;;  %1184 = vst.msk [vmem:[%s2125_s11 + $0x18] sm:$0xff] %vm2247_vm2, %v1176_v23 }
 0x5c3   : > { %v1170_v28 = vsel %vm2232_vm3, %v1169_v5, %v1152_v55 }
 0x5c4   : > { %v1178_v30 = vadd.f32 %v1499_v29, %v1170_v28  ;;  %1182 = vst.msk [vmem:[%s2125_s11 + $0x8] sm:$0xff] %vm2248_vm4, %v1174_v1 }
 0x5c5   : > { %1188 = vst.msk [vmem:[%s2125_s11 + $0x38] sm:$0xff] %vm2249_vm5, %v1180_v27 }
 0x5c6   : > { %1186 = vst.msk [vmem:[%s2125_s11 + $0x28] sm:$0xff] %vm2250_vm6, %v1178_v30 }
 0x5c7   : > { %1587 = shalt.err (!%p1584_p8)
}
 0x5c8   : > { %s1672_s28 = smov 128   ;;  %s1673_s12 = smov 8  }
 0x5c9   : > { %1324 = dma.vmem_to_hbm [thread:$0]  (%p1761_p11), %s1203_s1, 1024, %s1205_s8, %s1190_s18, %s1672_s28, %s1672_s28, %s1673_s12  }
 0x5ca PF: > { %s1219_s19 = sand.u32 1, %s1618_s21   ;;  %p2251_p9 = scmp.ge.s32.totalorder %s1630_s24, 2 }
 0x5cb   : > { %s1220_s7 = scalar_lea.sflag [#allocation4], %s1219_s19 }
 0x5cc   : > { %p1335_p10 = pnand %p2251_p9, %p1765_p12 }
 0x5ce   : > { %p1336_p1 = pneg %p1335_p10 }
 0x5d0   : > { %1613 = dma.done.wait (%p1336_p1), %s1220_s7, 1024  }
 0x5d1   : > { %1615 = vsyncadd (%p1336_p1), %s1220_s7, 4294966272  ;;  %s2252_s11 = sld [smem:[#allocation11_spill]]  ;;  %p20_p2 = scmp.ge.s32.totalorder %s1734_s27, 4  }
 0x5d2   : > { %s2253_s23 = sld [smem:[#allocation12_spill]]  ;;  %s2254_s21 = smov %s1622_s22 }
 0x5d3   : > { %s2256_s24 = smov %s1734_s27  ;;  %22 = sbr.rel (!%p20_p2) target bundleno = 8 (0x8), region = 93 }
 0x5d7   : > { %s2255_s22 = smov %s2252_s11 }
 0x5d8   :  { %1226 = vsyncpa [#allocation3], 1 }
 0x5d9   :  { %1228 = vsyncpa [#allocation3 + $0x1], 1 }
 0x5da   :  { %1229 = vsyncpa [#allocation6], 1 }
 0x5db   :  { %1230 = vsyncpa [#allocation4], 1 }
 0x5dc   :  { %1232 = vsyncpa [#allocation4 + $0x1], 1 }

</bundles_post_ra>
